<compile_context>
chip_gen: v6e
topology: v6e:2x2x1
jax: 0.10.0
libtpu: 0.0.40
codegen_flags: <defaults>
</compile_context>

<pallas_src>
import jax
import jax.numpy as jnp
from jax.experimental import pallas as pl
from jax.experimental.pallas import tpu as pltpu


# ---------------------------------------------------------------------------
# Kernels
# ---------------------------------------------------------------------------

def _mlp_kernel_single_k(x_ref, w1_ref, b1_ref, w2_ref, b2_ref, o_ref):
    """Fast path: the whole flattened feature dim fits one K slab (grid_k == 1).
    No accumulator scratch, no predicated init/finalize."""
    # Layer 1: bf16 x bf16 -> f32 on the MXU.
    h = jnp.dot(x_ref[...], w1_ref[...], preferred_element_type=jnp.float32)
    h = h + b1_ref[...]
    h = jnp.maximum(h, 0.01 * h)                      # LeakyReLU(0.01) in f32
    # Layer 2 (tiny HxC): bf16 inputs, f32 accumulation.
    y = jnp.dot(h.astype(jnp.bfloat16), w2_ref[...].astype(jnp.bfloat16),
                preferred_element_type=jnp.float32) + b2_ref[...]
    o_ref[...] = jnp.maximum(y, 0.01 * y).astype(o_ref.dtype)


def _mlp_kernel_multi_k(x_ref, w1_ref, b1_ref, w2_ref, b2_ref, o_ref, acc_ref):
    """General path: K-reduction over feature slabs into an f32 VMEM scratch."""
    k = pl.program_id(1)

    @pl.when(k == 0)
    def _init():
        acc_ref[...] = jnp.zeros_like(acc_ref)

    # Layer 1 partial product for this K slab: bf16 x bf16 -> f32 accumulate.
    acc_ref[...] += jnp.dot(
        x_ref[...], w1_ref[...], preferred_element_type=jnp.float32
    )

    @pl.when(k == pl.num_programs(1) - 1)
    def _finalize():
        h = acc_ref[...] + b1_ref[...]
        h = jnp.maximum(h, 0.01 * h)                  # LeakyReLU(0.01) in f32
        y = jnp.dot(h.astype(jnp.bfloat16), w2_ref[...].astype(jnp.bfloat16),
                    preferred_element_type=jnp.float32) + b2_ref[...]
        o_ref[...] = jnp.maximum(y, 0.01 * y).astype(o_ref.dtype)


# ---------------------------------------------------------------------------
# Trace-time tile / budget selection
# ---------------------------------------------------------------------------

def _vmem_budget():
    """Per-TensorCore VMEM limit with an explicit v7x clamp (64 MiB per core)."""
    cap = None
    try:
        cap = int(pltpu.get_tpu_info().vmem_capacity_bytes)
    except Exception:
        cap = None
    kind = ""
    try:
        kind = jax.devices()[0].device_kind.lower()
    except Exception:
        pass
    is_v7 = "v7" in kind or "7x" in kind
    if cap is None:
        cap = (64 << 20) if is_v7 else (128 << 20)
    if is_v7:
        # Per-TC VMEM is 64 MiB on v7x even if the query reports the chip total.
        cap = min(cap, 64 << 20)
        return min(int(cap * 0.75), 48 << 20)
    return min(int(cap * 0.8), 100 << 20)


def _pick_tiles(B, F, H, C, budget_bytes):
    """Choose (TM, TK): largest batch tile (<= 2048) and K slab such that the
    double-buffered bf16 x / W1 tiles + f32 accumulator + output buffers fit
    the VMEM budget. Trace-time Python only."""
    TM = min(B, 2048)
    if TM < B:
        TM = max(8, (TM // 8) * 8)   # partial-batch tiling: keep /8 sublane alignment

    def fits(tm, tk, with_acc):
        x_w1 = 2 * 2 * (tm * tk + tk * H)        # double-buffered bf16 x + W1
        out = 2 * 4 * tm * C                     # double-buffered f32 output
        acc = 4 * tm * H if with_acc else 0      # f32 accumulator scratch
        return x_w1 + out + acc <= budget_bytes

    while True:
        if fits(TM, F, False):
            return TM, F                          # whole feature dim in one slab
        if F % 128 == 0:
            tk = F - 128
            while tk >= 128:
                if F % tk == 0 and fits(TM, tk, True):
                    return TM, tk
                tk -= 128
        if TM <= 8:
            return TM, F                          # give up; vmem_limit surfaces it
        TM = max(8, TM // 2)                      # shrink batch tile and retry


# ---------------------------------------------------------------------------
# Wrapper
# ---------------------------------------------------------------------------

def mlp_forward(x, w1, b1, w2, b2):
    """x: (B, ...) flattened to (B, F). w1: (F, H), b1: (1, H), w2: (H, C), b2: (1, C).
    x / W1 streamed as bf16 (dominant HBM traffic); w2/biases stay f32; all
    accumulation and elementwise math in f32."""
    B = x.shape[0]
    xf = x.reshape(B, -1)
    if xf.dtype != jnp.bfloat16:
        xf = xf.astype(jnp.bfloat16)          # halve the dominant x HBM read
    w1 = w1.astype(jnp.bfloat16)              # dominant weight stream -> bf16
    w2 = w2.reshape(w1.shape[1], -1).astype(jnp.float32)   # tiny: keep f32 in HBM
    b1 = b1.reshape(1, -1).astype(jnp.float32)
    b2 = b2.reshape(1, -1).astype(jnp.float32)

    F = xf.shape[1]
    H = w1.shape[1]
    C = w2.shape[1]

    vmem_limit = _vmem_budget()
    TM, TK = _pick_tiles(B, F, H, C, vmem_limit)

    grid_m = pl.cdiv(B, TM)
    grid_k = pl.cdiv(F, TK)

    cost = pl.CostEstimate(
        flops=2 * B * F * H + 2 * B * H * C,
        transcendentals=0,
        bytes_accessed=(xf.size * 2 + w1.size * 2 + w2.size * 4
                        + b1.size * 4 + b2.size * 4 + B * C * 4),
    )

    out_shape = jax.ShapeDtypeStruct((B, C), jnp.float32)

    if grid_k == 1:
        # Fast path: no accumulator, 1-D grid over batch tiles.
        grid_spec = pltpu.PrefetchScalarGridSpec(
            num_scalar_prefetch=0,
            grid=(grid_m,),
            in_specs=[
                pl.BlockSpec((TM, F), lambda m: (m, 0)),    # x tile
                pl.BlockSpec((F, H), lambda m: (0, 0)),     # W1 (whole feature dim)
                pl.BlockSpec((1, H), lambda m: (0, 0)),     # b1
                pl.BlockSpec((H, C), lambda m: (0, 0)),     # W2 (tiny, f32)
                pl.BlockSpec((1, C), lambda m: (0, 0)),     # b2
            ],
            out_specs=pl.BlockSpec((TM, C), lambda m: (m, 0)),
            scratch_shapes=[],
        )
        kernel = _mlp_kernel_single_k
        dim_sem = ("parallel",)
    else:
        grid_spec = pltpu.PrefetchScalarGridSpec(
            num_scalar_prefetch=0,
            grid=(grid_m, grid_k),
            in_specs=[
                pl.BlockSpec((TM, TK), lambda m, k: (m, k)),   # x tile
                pl.BlockSpec((TK, H), lambda m, k: (k, 0)),    # W1 K-slab
                pl.BlockSpec((1, H), lambda m, k: (0, 0)),     # b1
                pl.BlockSpec((H, C), lambda m, k: (0, 0)),     # W2 (tiny, f32)
                pl.BlockSpec((1, C), lambda m, k: (0, 0)),     # b2
            ],
            out_specs=pl.BlockSpec((TM, C), lambda m, k: (m, 0)),  # resident over k
            scratch_shapes=[pltpu.VMEM((TM, H), jnp.float32)],     # f32 accumulator
        )
        kernel = _mlp_kernel_multi_k
        dim_sem = ("parallel", "arbitrary")

    return pl.pallas_call(
        kernel,
        out_shape=out_shape,
        grid_spec=grid_spec,
        compiler_params=pltpu.CompilerParams(
            dimension_semantics=dim_sem,
            vmem_limit_bytes=vmem_limit,
        ),
        cost_estimate=cost,
    )(xf, w1, b1, w2, b2)


def _ref_forward(x, w1, b1, w2, b2):
    """Pure-JAX reference mirroring the kernel's numerics (bf16 streams, f32 acc)."""
    B = x.shape[0]
    xf = x.reshape(B, -1).astype(jnp.bfloat16)
    w1b = w1.astype(jnp.bfloat16)
    b1f = b1.reshape(1, -1).astype(jnp.float32)
    b2f = b2.reshape(1, -1).astype(jnp.float32)
    h = jnp.dot(xf, w1b, preferred_element_type=jnp.float32) + b1f
    h = jnp.maximum(h, 0.01 * h)
    y = jnp.dot(h.astype(jnp.bfloat16),
                w2.reshape(w1.shape[1], -1).astype(jnp.float32).astype(jnp.bfloat16),
                preferred_element_type=jnp.float32) + b2f
    return jnp.maximum(y, 0.01 * y)


if __name__ == "__main__":
    # Shapes implied by the module: any (B, *) input flattened to (B, input_features).
    B, Cin, Sp = 2, 4, 16                   # x: (2, 4, 16, 16) -> input_features = 1024
    input_features = Cin * Sp * Sp
    hidden_neurons = 32                     # config['hidden_neurons']
    num_classes = 8

    key = jax.random.PRNGKey(0)
    kx, k1, k2, k3, k4 = jax.random.split(key, 5)

    x = jax.random.normal(kx, (B, Cin, Sp, Sp), dtype=jnp.float32)

    # Deterministic init mimicking nn.Linear's U(-1/sqrt(fan_in), +1/sqrt(fan_in)).
    bound1 = 1.0 / (input_features ** 0.5)
    w1 = jax.random.uniform(k1, (input_features, hidden_neurons),
                            minval=-bound1, maxval=bound1, dtype=jnp.float32)
    b1 = jax.random.uniform(k2, (1, hidden_neurons),
                            minval=-bound1, maxval=bound1, dtype=jnp.float32)
    bound2 = 1.0 / (hidden_neurons ** 0.5)
    w2 = jax.random.uniform(k3, (hidden_neurons, num_classes),
                            minval=-bound2, maxval=bound2, dtype=jnp.float32)
    b2 = jax.random.uniform(k4, (1, num_classes),
                            minval=-bound2, maxval=bound2, dtype=jnp.float32)

    out = jax.block_until_ready(mlp_forward(x, w1, b1, w2, b2))
    ref = jax.block_until_ready(_ref_forward(x, w1, b1, w2, b2))

    assert out.shape == (B, num_classes), out.shape
    assert jnp.allclose(out, ref, atol=1e-4, rtol=1e-4), "mismatch vs reference"
    # TODO(synk): dropout / batchnorm / softmax are defined in __init__ but never
    # used in forward, so they are intentionally not implemented here.
    print("KERNEL_OK")
</pallas_src>

<mosaic_0001>
module attributes {stable_mosaic.version = 11 : i64} {
  func.func @_mlp_kernel_single_k(%arg0: i32, %arg1: memref<2x1024xbf16, #tpu.memory_space<vmem>>, %arg2: memref<1024x32xbf16, #tpu.memory_space<vmem>>, %arg3: memref<1x32xf32, #tpu.memory_space<vmem>>, %arg4: memref<32x8xf32, #tpu.memory_space<vmem>>, %arg5: memref<1x8xf32, #tpu.memory_space<vmem>>, %arg6: memref<2x8xf32, #tpu.memory_space<vmem>>) attributes {dimension_semantics = [#tpu.dimension_semantics<parallel>], iteration_bounds = array<i64: 1>, scalar_prefetch = 0 : i64, scratch_operands = 0 : i64, tpu.core_type = #tpu.core_type<tc>, window_params = [{transform_indices = @transform_0, window_bounds = array<i64: 2, 1024>}, {pipeline_mode = #tpu.pipeline_mode<synchronous>, transform_indices = @transform_1, window_bounds = array<i64: 1024, 32>}, {pipeline_mode = #tpu.pipeline_mode<synchronous>, transform_indices = @transform_2, window_bounds = array<i64: 1, 32>}, {pipeline_mode = #tpu.pipeline_mode<synchronous>, transform_indices = @transform_3, window_bounds = array<i64: 32, 8>}, {pipeline_mode = #tpu.pipeline_mode<synchronous>, transform_indices = @transform_4, window_bounds = array<i64: 1, 8>}, {transform_indices = @transform_5, window_bounds = array<i64: 2, 8>}]} {
    %c0 = arith.constant 0 : index
    %c0_0 = arith.constant 0 : index
    %0 = vector.load %arg1[%c0, %c0_0] : memref<2x1024xbf16, #tpu.memory_space<vmem>>, vector<2x1024xbf16>
    %c0_1 = arith.constant 0 : index
    %c0_2 = arith.constant 0 : index
    %1 = vector.load %arg2[%c0_1, %c0_2] : memref<1024x32xbf16, #tpu.memory_space<vmem>>, vector<1024x32xbf16>
    %cst = arith.constant dense<0.000000e+00> : vector<2x32xf32>
    %2 = tpu.matmul %0, %1, %cst {dimension_numbers = #tpu.dot_dimension_numbers<[1], [0], [0], [1], [0, 0, 1, 1], [], []>} : vector<2x1024xbf16>, vector<1024x32xbf16>, vector<2x32xf32> -> vector<2x32xf32>
    %c0_3 = arith.constant 0 : index
    %c0_4 = arith.constant 0 : index
    %3 = vector.load %arg3[%c0_3, %c0_4] : memref<1x32xf32, #tpu.memory_space<vmem>>, vector<1x32xf32>
    %4 = vector.broadcast %3 : vector<1x32xf32> to vector<2x32xf32>
    %5 = arith.addf %2, %4 : vector<2x32xf32>
    %cst_5 = arith.constant 0.00999999977 : f32
    %6 = vector.broadcast %cst_5 : f32 to vector<2x32xf32>
    %7 = arith.mulf %6, %5 : vector<2x32xf32>
    %8 = arith.maximumf %5, %7 : vector<2x32xf32>
    %9 = arith.truncf %8 : vector<2x32xf32> to vector<2x32xbf16>
    %c0_6 = arith.constant 0 : index
    %c0_7 = arith.constant 0 : index
    %10 = vector.load %arg4[%c0_6, %c0_7] : memref<32x8xf32, #tpu.memory_space<vmem>>, vector<32x8xf32>
    %11 = arith.truncf %10 : vector<32x8xf32> to vector<32x8xbf16>
    %cst_8 = arith.constant dense<0.000000e+00> : vector<2x8xf32>
    %12 = tpu.matmul %9, %11, %cst_8 {dimension_numbers = #tpu.dot_dimension_numbers<[1], [0], [0], [1], [0, 0, 1, 1], [], []>} : vector<2x32xbf16>, vector<32x8xbf16>, vector<2x8xf32> -> vector<2x8xf32>
    %c0_9 = arith.constant 0 : index
    %c0_10 = arith.constant 0 : index
    %13 = vector.load %arg5[%c0_9, %c0_10] : memref<1x8xf32, #tpu.memory_space<vmem>>, vector<1x8xf32>
    %14 = vector.broadcast %13 : vector<1x8xf32> to vector<2x8xf32>
    %15 = arith.addf %12, %14 : vector<2x8xf32>
    %cst_11 = arith.constant 0.00999999977 : f32
    %16 = vector.broadcast %cst_11 : f32 to vector<2x8xf32>
    %17 = arith.mulf %16, %15 : vector<2x8xf32>
    %18 = arith.maximumf %15, %17 : vector<2x8xf32>
    %c0_12 = arith.constant 0 : index
    %c0_13 = arith.constant 0 : index
    %19 = vector.load %arg6[%c0_12, %c0_13] : memref<2x8xf32, #tpu.memory_space<vmem>>, vector<2x8xf32>
    tpu.vector_store %arg6[%c0_12, %c0_13], %18 {strides = array<i32>} : memref<2x8xf32, #tpu.memory_space<vmem>>, vector<2x8xf32>,
    return
  }
  func.func @transform_0(%arg0: i32) -> (i32, i32) {
    %c0_i32 = arith.constant 0 : i32
    %c0_i32_0 = arith.constant 0 : i32
    return %arg0, %c0_i32 : i32, i32
  }
  func.func @transform_1(%arg0: i32) -> (i32, i32) {
    %c0_i32 = arith.constant 0 : i32
    %c0_i32_0 = arith.constant 0 : i32
    %c0_i32_1 = arith.constant 0 : i32
    return %c0_i32, %c0_i32_0 : i32, i32
  }
  func.func @transform_2(%arg0: i32) -> (i32, i32) {
    %c0_i32 = arith.constant 0 : i32
    %c0_i32_0 = arith.constant 0 : i32
    %c0_i32_1 = arith.constant 0 : i32
    return %c0_i32, %c0_i32_0 : i32, i32
  }
  func.func @transform_3(%arg0: i32) -> (i32, i32) {
    %c0_i32 = arith.constant 0 : i32
    %c0_i32_0 = arith.constant 0 : i32
    %c0_i32_1 = arith.constant 0 : i32
    return %c0_i32, %c0_i32_0 : i32, i32
  }
  func.func @transform_4(%arg0: i32) -> (i32, i32) {
    %c0_i32 = arith.constant 0 : i32
    %c0_i32_0 = arith.constant 0 : i32
    %c0_i32_1 = arith.constant 0 : i32
    return %c0_i32, %c0_i32_0 : i32, i32
  }
  func.func @transform_5(%arg0: i32) -> (i32, i32) {
    %c0_i32 = arith.constant 0 : i32
    %c0_i32_0 = arith.constant 0 : i32
    return %arg0, %c0_i32 : i32, i32
  }
}

</mosaic_0001>

<bundles_post_ra>
// kernel: tpu_custom_call.1
= control target key start
LH: loop header
LB: loop body
LE: loop exit
PB: predicated region body
PF: predicated region fallthrough
CT: control target
= control target key end

     0   :  { %v163_v28 = vlaneseq  ;;  %v1095_v36 = vmov 1966171168   ;;  %s1358_s0 = inlined_call_operand.vmem [shape: bf16[2,1024], index: 0, kind: input, shape index: {}]   ;;  %s1359_s1 = inlined_call_operand.vmem [shape: bf16[1024,32], index: 1, kind: input, shape index: {}]   ;;  %s1360_s2 = inlined_call_operand.vmem [shape: f32[1,32], index: 2, kind: input, shape index: {}]   ;;  %s1361_s3 = inlined_call_operand.vmem [shape: f32[32,8], index: 3, kind: input, shape index: {}]   ;;  %s1362_s4 = inlined_call_operand.vmem [shape: f32[1,8], index: 4, kind: input, shape index: {}]   ;;  %s1363_s5 = inlined_call_operand.hbm [shape: f32[2,8], index: 5, kind: output, shape index: {}]  }
   0x1   :  { %v1008_v0 = vld [vmem:[%s1359_s1 + $0x78] sm:$0xff]   ;;  %v1012_v4 = vld [vmem:[%s1359_s1 + $0x70] sm:$0xff]   ;;  %v1016_v8 = vld [vmem:[%s1359_s1 + $0x68] sm:$0xff]   ;;  %v161_v37 = vunpack.c.l.s4 %v1095_v36 }
   0x2   :  { %v1009_v1 = vld [vmem:[%s1359_s1 + $0xf8] sm:$0xff]   ;;  %905 = vmatprep.subr.bf16.mxu0 %v1008_v0  ;;  %v1013_v5 = vld [vmem:[%s1359_s1 + $0xf0] sm:$0xff]   ;;  %v1017_v9 = vld [vmem:[%s1359_s1 + $0xe8] sm:$0xff]   ;;  %v164_v33 = vshrl.u32 %v163_v28, 7 }
   0x3   :  { %v1010_v2 = vld [vmem:[%s1359_s1 + $0x38] sm:$0xff]   ;;  %927 = vmatprep.subr.bf16.mxu1 %v1009_v1  ;;  %v1014_v6 = vld [vmem:[%s1359_s1 + $0x30] sm:$0xff]   ;;  %v1018_v10 = vld [vmem:[%s1359_s1 + $0x28] sm:$0xff]   ;;  %v162_v40 = vunpack.c.0.s8 %v161_v37 }
   0x4   :  { %v1011_v3 = vld [vmem:[%s1359_s1 + $0xb8] sm:$0xff]   ;;  %906 = vmatpush3.bf16.msra.mxu0 %v1010_v2  ;;  %v1015_v7 = vld [vmem:[%s1359_s1 + $0xb0] sm:$0xff]   ;;  %v1019_v11 = vld [vmem:[%s1359_s1 + $0xa8] sm:$0xff]  }
   0x5   :  { %928 = vmatpush3.bf16.msra.mxu1 %v1011_v3  ;;  %907 = vmatprep.subr.bf16.mxu0 %v1012_v4  ;;  %v1020_v12 = vld [vmem:[%s1359_s1 + $0x60] sm:$0xff]   ;;  %v1024_v16 = vld [vmem:[%s1359_s1 + $0x58] sm:$0xff]   ;;  %v1028_v20 = vld [vmem:[%s1359_s1 + $0x50] sm:$0xff]   ;;  %v1234_v41 = vsub.s32 %v162_v40, %v164_v33 }
   0x6   :  { %929 = vmatprep.subr.bf16.mxu1 %v1013_v5  ;;  %v1021_v13 = vld [vmem:[%s1359_s1 + $0xe0] sm:$0xff]   ;;  %v1025_v17 = vld [vmem:[%s1359_s1 + $0xd8] sm:$0xff]   ;;  %v1029_v21 = vld [vmem:[%s1359_s1 + $0xd0] sm:$0xff]  }
   0x7   :  { %v1022_v14 = vld [vmem:[%s1359_s1 + $0x20] sm:$0xff]   ;;  %v1026_v18 = vld [vmem:[%s1359_s1 + $0x18] sm:$0xff]   ;;  %v1030_v22 = vld [vmem:[%s1359_s1 + $0x10] sm:$0xff]  }
   0x8   :  { %908 = vmatpush3.bf16.msra.mxu0 %v1014_v6  ;;  %v1023_v15 = vld [vmem:[%s1359_s1 + $0xa0] sm:$0xff]   ;;  %v1027_v19 = vld [vmem:[%s1359_s1 + $0x98] sm:$0xff]   ;;  %v1031_v23 = vld [vmem:[%s1359_s1 + $0x90] sm:$0xff]  }
   0x9   :  { %930 = vmatpush3.bf16.msra.mxu1 %v1015_v7  ;;  %909 = vmatprep.subr.bf16.mxu0 %v1016_v8  ;;  %v1032_v24 = vld [vmem:[%s1359_s1 + $0x48] sm:$0xff]   ;;  %v1036_v29 = vld [vmem:[%s1359_s1 + $0x40] sm:$0xff]   ;;  %v1041_v35 = vld [vmem:[%s1359_s1 + $0x178] sm:$0xff]  }
   0xa   :  { %931 = vmatprep.subr.bf16.mxu1 %v1017_v9  ;;  %v1033_v25 = vld [vmem:[%s1359_s1 + $0xc8] sm:$0xff]   ;;  %v1037_v30 = vld [vmem:[%s1359_s1 + $0xc0] sm:$0xff]   ;;  %v1042_v38 = vld [vmem:[%s1359_s1 + $0x1f8] sm:$0xff]  }
   0xb   :  { %v1034_v26 = vld [vmem:[%s1359_s1 + $0x8] sm:$0xff]   ;;  %v1038_v31 = vld [vmem:[%s1359_s1] sm:$0xff]   ;;  %v1043_v48 = vld [vmem:[%s1359_s1 + $0x138] sm:$0xff]  }
   0xc   :  { %910 = vmatpush3.bf16.msra.mxu0 %v1018_v10  ;;  %v1035_v27 = vld [vmem:[%s1359_s1 + $0x88] sm:$0xff]   ;;  %v1039_v32 = vld [vmem:[%s1359_s1 + $0x80] sm:$0xff]   ;;  %v1045_v51 = vld [vmem:[%s1359_s1 + $0x170] sm:$0xff]  }
   0xd   :  { %932 = vmatpush3.bf16.msra.mxu1 %v1019_v11  ;;  %911 = vmatprep.subr.bf16.mxu0 %v1020_v12  ;;  %v22_v34 = vld [vmem:[%s1358_s0] sm:$0xff]  ;;  %v1044_v53 = vld [vmem:[%s1359_s1 + $0x1b8] sm:$0xff]   ;;  %v1046_v54 = vld [vmem:[%s1359_s1 + $0x1f0] sm:$0xff]  }
   0xe   :  { %933 = vmatprep.subr.bf16.mxu1 %v1021_v13  ;;  %v159_v39 = vcombine.high %v22_v34, %v22_v34  ;;  %v166_v42 = vrot.slane %v22_v34, %v1234_v41  ;;  %v1047_v56 = vld [vmem:[%s1359_s1 + $0x130] sm:$0xff]   ;;  %v1049_v57 = vld [vmem:[%s1359_s1 + $0x168] sm:$0xff]   ;;  %v1053_v61 = vld [vmem:[%s1359_s1 + $0x160] sm:$0xff]  }
   0xf   :  { %v1048_v58 = vld [vmem:[%s1359_s1 + $0x1b0] sm:$0xff]   ;;  %v1050_v59 = vld [vmem:[%s1359_s1 + $0x1e8] sm:$0xff]   ;;  %v1054_v63 = vld [vmem:[%s1359_s1 + $0x1e0] sm:$0xff]  }
  0x10   :  { %912 = vmatpush3.bf16.msra.mxu0 %v1022_v14  ;;  %v1238_v43 = vrot.slane %v159_v39, %v1234_v41  ;;  %v174_v44 = vcombine.high %v166_v42, %v166_v42  ;;  %v182_v45 = vrot.slane %v166_v42, %v1234_v41  ;;  %v1051_v60 = vld [vmem:[%s1359_s1 + $0x128] sm:$0xff]   ;;  %v1055_v0 = vld [vmem:[%s1359_s1 + $0x120] sm:$0xff]   ;;  %v1057_v1 = vld [vmem:[%s1359_s1 + $0x158] sm:$0xff]  }
  0x11   :  { %934 = vmatpush3.bf16.msra.mxu1 %v1023_v15  ;;  %913 = vmatprep.subr.bf16.mxu0 %v1024_v16  ;;  %v1052_v62 = vld [vmem:[%s1359_s1 + $0x1a8] sm:$0xff]   ;;  %v1056_v2 = vld [vmem:[%s1359_s1 + $0x1a0] sm:$0xff]   ;;  %v1058_v3 = vld [vmem:[%s1359_s1 + $0x1d8] sm:$0xff]  }
  0x12   :  { %935 = vmatprep.subr.bf16.mxu1 %v1025_v17  ;;  %v175_v46 = vcombine.high %v1238_v43, %v1238_v43  ;;  %v196_v47 = vrot.slane %v174_v44, %v1234_v41  ;;  %v204_v50 = vcombine.high %v182_v45, %v182_v45  ;;  %v1059_v4 = vld [vmem:[%s1359_s1 + $0x118] sm:$0xff]   ;;  %v1061_v5 = vld [vmem:[%s1359_s1 + $0x150] sm:$0xff]   ;;  %v1065_v9 = vld [vmem:[%s1359_s1 + $0x148] sm:$0xff]  }
  0x13   :  { %v1060_v6 = vld [vmem:[%s1359_s1 + $0x198] sm:$0xff]   ;;  %v1062_v7 = vld [vmem:[%s1359_s1 + $0x1d0] sm:$0xff]  }
  0x14   :  { %914 = vmatpush3.bf16.msra.mxu0 %v1026_v18  ;;  %v203_v49 = vrot.slane %v175_v46, %v1234_v41  ;;  %632 = vmatprep.mubr.bf16.mxu0 %v196_v47  ;;  %v206_v52 = vcombine.high %v196_v47, %v196_v47  ;;  %v1063_v8 = vld [vmem:[%s1359_s1 + $0x110] sm:$0xff]  }
  0x15   :  { %936 = vmatpush3.bf16.msra.mxu1 %v1027_v19  ;;  %915 = vmatprep.subr.bf16.mxu0 %v1028_v20 }
  0x16   :  { %937 = vmatprep.subr.bf16.mxu1 %v1029_v21  ;;  %v207_v55 = vcombine.high %v203_v49, %v203_v49  ;;  %672 = vmatprep.mubr.bf16.mxu1 %v206_v52 }
  0x18   :  { %916 = vmatpush3.bf16.msra.mxu0 %v1030_v22 }
  0x19   :  { %938 = vmatpush3.bf16.msra.mxu1 %v1031_v23  ;;  %917 = vmatprep.subr.bf16.mxu0 %v1032_v24 }
  0x1a   :  { %939 = vmatprep.subr.bf16.mxu1 %v1033_v25 }
  0x1c   :  { %918 = vmatpush3.bf16.msra.mxu0 %v1034_v26 }
  0x1d   :  { %940 = vmatpush3.bf16.msra.mxu1 %v1035_v27  ;;  %919 = vmatprep.subr.bf16.mxu0 %v1036_v29 }
  0x1e   :  { %941 = vmatprep.subr.bf16.mxu1 %v1037_v30 }
  0x20   :  { %920 = vmatpush3.bf16.msra.mxu0 %v1038_v31 }
  0x21   :  { %942 = vmatpush3.bf16.msra.mxu1 %v1039_v32  ;;  %949 = vmatprep.subr.bf16.mxu0 %v1041_v35 }
  0x22   :  { %971 = vmatprep.subr.bf16.mxu1 %v1042_v38 }
  0x23   :  { %633 = vmatmul.mubr.bf16.vlgmr.msra.gmra.mxu0 %v182_v45 }
  0x24   :  { %950 = vmatpush3.bf16.msra.mxu0 %v1043_v48  ;;  %673 = vmatmul.mubr.bf16.vlgmr.msra.gmra.mxu1 %v204_v50 }
  0x25   :  { %951 = vmatprep.subr.bf16.mxu0 %v1045_v51  ;;  %972 = vmatpush3.bf16.msra.mxu1 %v1044_v53 }
  0x26   :  { %712 = vmatprep.mubr.bf16.mxu0 %v203_v49  ;;  %973 = vmatprep.subr.bf16.mxu1 %v1046_v54 }
  0x27   :  { %752 = vmatprep.mubr.bf16.mxu1 %v207_v55 }
  0x28   :  { %952 = vmatpush3.bf16.msra.mxu0 %v1047_v56 }
  0x29   :  { %953 = vmatprep.subr.bf16.mxu0 %v1049_v57  ;;  %974 = vmatpush3.bf16.msra.mxu1 %v1048_v58 }
  0x2a   :  { %975 = vmatprep.subr.bf16.mxu1 %v1050_v59 }
  0x2c   :  { %954 = vmatpush3.bf16.msra.mxu0 %v1051_v60 }
  0x2d   :  { %955 = vmatprep.subr.bf16.mxu0 %v1053_v61  ;;  %976 = vmatpush3.bf16.msra.mxu1 %v1052_v62 }
  0x2e   :  { %977 = vmatprep.subr.bf16.mxu1 %v1054_v63 }
  0x30   :  { %956 = vmatpush3.bf16.msra.mxu0 %v1055_v0 }
  0x31   :  { %957 = vmatprep.subr.bf16.mxu0 %v1057_v1  ;;  %978 = vmatpush3.bf16.msra.mxu1 %v1056_v2 }
  0x32   :  { %979 = vmatprep.subr.bf16.mxu1 %v1058_v3 }
  0x34   :  { %958 = vmatpush3.bf16.msra.mxu0 %v1059_v4 }
  0x35   :  { %959 = vmatprep.subr.bf16.mxu0 %v1061_v5 }
  0x36   :  { %10 = vsyncpa [#allocation3], 0  ;;  %980 = vmatpush3.bf16.msra.mxu1 %v1060_v6  ;;  %v1064_v10 = vld [vmem:[%s1359_s1 + $0x190] sm:$0xff]   ;;  %v1066_v11 = vld [vmem:[%s1359_s1 + $0x1c8] sm:$0xff]   ;;  %v189_v17 = vrot.slane %v1238_v43, %v1234_v41  ;;  %v1096_v23 = vmov 0.0   ;;  %vm1097_vm0 = vmmov 0  }
  0x37   :  { %981 = vmatprep.subr.bf16.mxu1 %v1062_v7  ;;  %v1067_v12 = vld [vmem:[%s1359_s1 + $0x108] sm:$0xff]   ;;  %v1069_v13 = vld [vmem:[%s1359_s1 + $0x140] sm:$0xff]   ;;  %v765_v20 = vld [vmem:[%s1361_s3 + $0x10] sm:$0xff]  ;;  %vm776_vm1 = vcmask 261120   ;;  %s1098_s29 = smov [#allocation2]   ;;  %vm822_vm2 = vcmask 58368  }
  0x38   :  { %960 = vmatpush3.bf16.msra.mxu0 %v1063_v8  ;;  %v1068_v14 = vld [vmem:[%s1359_s1 + $0x188] sm:$0xff]   ;;  %v1070_v15 = vld [vmem:[%s1359_s1 + $0x1c0] sm:$0xff]   ;;  %v205_v19 = vcombine.high %v189_v17, %v189_v17  ;;  %v766_v21 = vld [vmem:[%s1361_s3 + $0x18] sm:$0xff]  ;;  %s830_s30 = sshll.u32 %s1098_s29, 4  ;;  %s831_s30 = int_to_ptr.vmem [resolvable:$true] %s830_s30 }
  0x39   :  { %961 = vmatprep.subr.bf16.mxu0 %v1065_v9  ;;  %v1071_v16 = vld [vmem:[%s1359_s1 + $0x100] sm:$0xff]   ;;  %v768_v22 = vpack.c.bf16 %v766_v21, %v765_v20  ;;  %v764_v25 = vld [vmem:[%s1361_s3 + $0x8] sm:$0xff]  ;;  %s1073_s6 = scalar_lea.vmem %s831_s30, 32  ;;  %p1078_p1 = scmp.lt.s32.totalorder %s831_s30, %s831_s30 }
  0x3a   :  { %982 = vmatpush3.bf16.msra.mxu1 %v1064_v10  ;;  %v1072_v18 = vld [vmem:[%s1359_s1 + $0x180] sm:$0xff]   ;;  %p1074_p0 = scmp.ne.s32.totalorder %s831_s30, %s1073_s6  ;;  %p1079_p2 = scmp.lt.s32.totalorder %s1073_s6, %s1073_s6 }
  0x3b   :  { %983 = vmatprep.subr.bf16.mxu1 %v1066_v11  ;;  %v763_v24 = vld [vmem:[%s1361_s3] sm:$0xff] }
  0x3c   :  { %962 = vmatpush3.bf16.msra.mxu0 %v1067_v12  ;;  %v767_v26 = vpack.c.bf16 %v764_v25, %v763_v24  ;;  %v838_v36 = vld [vmem:[%s1360_s2] ss:$0 sm:$0xff]  ;;  %p1080_p3 = por %p1079_p2, %p1078_p1 }
  0x3d   :  { %963 = vmatprep.subr.bf16.mxu0 %v1069_v13  ;;  %v903_v55 = vld [vmem:[%s1362_s4] ss:$0 sm:$0xff] }
  0x3e   :  { %984 = vmatpush3.bf16.msra.mxu1 %v1068_v14  ;;  %p1081_p4 = pnand %p1080_p3, %p1074_p0 }
  0x3f   :  { %985 = vmatprep.subr.bf16.mxu1 %v1070_v15 }
  0x40   :  { %964 = vmatpush3.bf16.msra.mxu0 %v1071_v16 }
  0x41   :  { %996 = vmatprep.subr.bf16.mxu0 %v1096_v23 }
  0x42   :  { %986 = vmatpush3.bf16.msra.mxu1 %v1072_v18 }
  0x43   :  { %713 = vmatmul.mubr.bf16.vlgmr.msra.gmra.mxu0 %v189_v17 }
  0x44   :  { %997 = vmatpush3.bf16.msra.mxu0 %v768_v22  ;;  %1000 = vmatprep.mubr.msk.bf16.mxu0 %vm1097_vm0, %v1096_v23 }
  0x45   :  { %753 = vmatmul.mubr.bf16.vlgmr.msra.gmra.mxu1 %v205_v19  ;;  %998 = vmatprep.subr.bf16.mxu0 %v1096_v23 }
  0x48   :  { %999 = vmatpush3.bf16.msra.mxu0 %v767_v26 }
  0xe3   :  { %v921_v27 = vpop.f32.mrf.mxu0 }
  0xe4   :  { %v943_v28 = vpop.f32.mrf.mxu1 }
  0xe5   :  { %v922_v29 = vpop.f32.mrf.mxu0 }
  0xe6   :  { %v944_v30 = vpop.f32.mrf.mxu1  ;;  %v923_v35 = vadd.f32 %v922_v29, %v921_v27 }
  0xe7   :  { %v924_v31 = vpop.f32.mrf.mxu0  ;;  %v945_v38 = vadd.f32 %v944_v30, %v943_v28 }
  0xe8   :  { %v946_v32 = vpop.f32.mrf.mxu1  ;;  %v635_v37 = vadd.f32 %v923_v35, %v838_v36 }
  0xe9   :  { %v925_v33 = vpop.f32.mrf.mxu0 }
  0xea   :  { %v947_v34 = vpop.f32.mrf.mxu1  ;;  %v675_v42 = vadd.f32 %v945_v38, %v635_v37 }
 0x103   :  { %v965_v39 = vpop.f32.mrf.mxu0 }
 0x105   :  { %v987_v40 = vpop.f32.mrf.mxu1  ;;  %v966_v41 = vpop.f32.mrf.mxu0 }
 0x106   :  { %v967_v43 = vadd.f32 %v966_v41, %v965_v39 }
 0x107   :  { %v988_v44 = vpop.f32.mrf.mxu1  ;;  %v968_v45 = vpop.f32.mrf.mxu0 }
 0x108   :  { %v715_v46 = vadd.f32 %v967_v43, %v675_v42  ;;  %v989_v47 = vadd.f32 %v988_v44, %v987_v40 }
 0x109   :  { %v990_v48 = vpop.f32.mrf.mxu1  ;;  %v969_v49 = vpop.f32.mrf.mxu0 }
 0x10a   :  { %v755_v50 = vadd.f32 %v989_v47, %v715_v46 }
 0x10b   :  { %v991_v51 = vpop.f32.mrf.mxu1 }
 0x10c   :  { %v760_v52 = vmul.f32 0.01, %v755_v50 }
 0x10e   :  { %v761_v53 = vmax.f32 %v755_v50, %v760_v52 }
 0x110   :  { %v762_v54 = vpack.c.bf16 %v761_v53, %v761_v53 }
 0x112   :  { %1001 = vmatmul.mubr.msk.bf16.vlgmr.msra.gmra.mxu0 %vm776_vm1, %v762_v54 }
 0x1d2   :  { %v814_v56 = vpop.f32.mrf.mxu0 }
 0x1d3   :  { %v815_v57 = vadd.f32 %v903_v55, %v814_v56 }
 0x1d4   :  { %v1002_v58 = vpop.f32.mrf.mxu0 }
 0x1d5   :  { %v820_v59 = vmul.f32 0.01, %v815_v57 }
 0x1d6   :  { %v817_v60 = vpop.f32.mrf.mxu0 }
 0x1d7   :  { %v821_v61 = vmax.f32 %v815_v57, %v820_v59 }
 0x1d8   :  { %v1003_v62 = vpop.f32.mrf.mxu0 }
 0x1d9   :  { %823 = vst.msk [vmem:[#allocation2] sm:$0x3] %vm822_vm2, %v821_v61 }
 0x1da   :  { %1084 = shalt.err (!%p1081_p4)
}
 0x1db   :  { %833 = dma.vmem_to_hbm [thread:$0]  %s831_s30, 32, %s1363_s5, [#allocation3]  }
 0x1dc   :  { %1093 = dma.done.wait [#allocation3], 32  }
 0x1dd   :  { %1094 = vsyncadd [#allocation3], 4294967264 }
 0x1de   :  { %837 = vsyncpa [#allocation3], 1 }

</bundles_post_ra>
